<compile_context>
chip_gen: v7x
topology: tpu7x:2x2x1
jax: 0.10.0
libtpu: 0.0.40
codegen_flags: <defaults>
</compile_context>

<pallas_src>
import functools

import jax
import jax.numpy as jnp
from jax.experimental import pallas as pl
from jax.experimental.pallas import tpu as pltpu


# ----------------------------- Pallas kernel -------------------------------- #

def _translink_kernel(
    x1e_ref, x1o_ref, x2e_ref, x2o_ref, x3e_ref, x3o_ref, x4e_ref, x4o_ref,
    b1_ref, b2a_ref, b2b_ref, b3a_ref, b3b_ref, b4a_ref, b4b_ref,
    w1_ref, w2a_ref, w2b_ref, w3a_ref, w3b_ref, w4a_ref, w4b_ref,
    r1_ref, r2_ref, r3_ref, r4_ref,
):
    """All four bn+relu+conv+pool stages fused; res1..res3 never leave VMEM."""

    def mm(a, b):
        # Cast activations to the host-chosen weight dtype right at the dot:
        # f32 weights -> pure f32 path (v5e), bf16 weights -> bf16 MXU path
        # (v6e/v7x).  Accumulation stays f32 in both cases.
        return jnp.dot(a.astype(b.dtype), b, preferred_element_type=jnp.float32)

    def relu_b(x, b):
        # BN scale already folded into the conv weight; only the adjusted bias
        # remains -> one add + one max per element (VPU).
        return jnp.maximum(x + b, 0.0)

    def pool_side(xe_ref, xo_ref, b_ref):
        # H-pool of an external branch: even/odd-H slabs were split on the
        # host, so the row-pair sum is a plain VPU add (no strided access).
        b = b_ref[...]
        return relu_b(xe_ref[...], b) + relu_b(xo_ref[...], b)

    def pool_res(r_ref, b_ref):
        # H-pool of the in-kernel residual: two strided sublane loads from the
        # already-written output ref (replaces the old hpool matmul).
        m = r_ref.shape[0] // 2
        b = b_ref[...]
        re = r_ref[pl.ds(0, m, stride=2), :]
        ro = r_ref[pl.ds(1, m, stride=2), :]
        return relu_b(re, b) + relu_b(ro, b)

    # ---- stage 1: bn1 + relu + H-pool (VPU) + conv1 + W-pool (folded, MXU) ---
    r1_ref[...] = mm(pool_side(x1e_ref, x1o_ref, b1_ref), w1_ref[...])

    # ---- stage 2: cat(res1, x2) fused as two matmuls (no concat materialized)
    r2_ref[...] = (mm(pool_res(r1_ref, b2a_ref), w2a_ref[...]) +
                   mm(pool_side(x2e_ref, x2o_ref, b2b_ref), w2b_ref[...]))

    # ---- stage 3 ----
    r3_ref[...] = (mm(pool_res(r2_ref, b3a_ref), w3a_ref[...]) +
                   mm(pool_side(x3e_ref, x3o_ref, b3b_ref), w3b_ref[...]))

    # ---- stage 4 (source reuses conv3's weights with bn4) ----
    r4_ref[...] = (mm(pool_res(r3_ref, b4a_ref), w4a_ref[...]) +
                   mm(pool_side(x4e_ref, x4o_ref, b4b_ref), w4b_ref[...]))


# ------------------------- host-side parameter folding ----------------------- #

def _fold_bn_conv(scale, bias, w, width, mxu_dtype):
    """Fold eval-mode BN + the W-half of the 2x2 avg-pool into a 1x1-conv weight.

    relu(s*x + b) = s * relu(x + b/s) for s > 0, so the per-channel BN scale is
    absorbed into the conv weight rows and only the adjusted bias stays in the
    kernel (positivity of s is checked eagerly on the concrete params before
    jit).  The returned weight is a block (W*Cin, Wp*Cout) matrix applying the
    conv per W position and summing W pairs with the 0.25 pooling factor; the
    H-half of the pool is a VPU row-pair add inside the kernel.
    """
    # TODO(synk): at production channel counts keep the weight as (Cin, Cout)
    # (channel-in-lane) and do the W-pool on the VPU — the block form below is
    # 1/Wp dense.  At this module's tiny C it buys lane density instead.
    cin, cout = w.shape
    wp = width // 2
    w_scaled = w * scale[:, None]                       # BN scale -> weight rows
    blk = jnp.einsum("pq,cd->pcqd", jnp.eye(wp, dtype=w.dtype), w_scaled) * 0.25
    blk = jnp.broadcast_to(blk[:, None, :, :, :], (wp, 2, cin, wp, cout))
    w_fold = blk.reshape(width * cin, wp * cout).astype(mxu_dtype)
    bias_fold = jnp.tile(bias / scale, width)[None, :].astype(jnp.float32)
    return bias_fold, w_fold


def _split_even_odd_rows(x_nchw):
    """NCHW -> two (N*H/2, W*C) channel-last slabs of the even / odd H rows."""
    n, c, h, w = x_nchw.shape
    x = jnp.transpose(x_nchw, (0, 2, 3, 1)).reshape(n, h // 2, 2, w * c)
    xe = x[:, :, 0, :].reshape(n * (h // 2), w * c)
    xo = x[:, :, 1, :].reshape(n * (h // 2), w * c)
    return xe, xo


# ------------------------------- parameters ---------------------------------- #

def _make_bn(key, c):
    k1, k2, k3, k4 = jax.random.split(key, 4)
    gamma = jax.random.uniform(k1, (c,), minval=0.8, maxval=1.2, dtype=jnp.float32)
    beta = jax.random.normal(k2, (c,), dtype=jnp.float32) * 0.1
    mean = jax.random.normal(k3, (c,), dtype=jnp.float32) * 0.1
    var = jax.random.uniform(k4, (c,), minval=0.5, maxval=1.5, dtype=jnp.float32)
    eps = 1e-5
    scale = gamma / jnp.sqrt(var + eps)
    bias = beta - mean * scale
    return scale, bias


def _make_conv(key, cin, cout):
    # Conv2d(cin, cout, 1, bias=False): weight (cout, cin, 1, 1) -> pass as (cin, cout)
    w = jax.random.normal(key, (cout, cin), dtype=jnp.float32) * (cin ** -0.5)
    return jnp.transpose(w)


def init_params(key, indepth, outdepth, growth):
    ks = jax.random.split(key, 8)
    return {
        "bn1": _make_bn(ks[0], indepth),
        "bn2": _make_bn(ks[1], indepth + growth),
        "bn3": _make_bn(ks[2], indepth + growth),
        "bn4": _make_bn(ks[3], indepth + growth),
        "w1": _make_conv(ks[4], indepth, outdepth),
        "w2": _make_conv(ks[5], indepth + growth, outdepth),
        "w3": _make_conv(ks[6], indepth + growth, outdepth),
        "w4": _make_conv(ks[7], indepth + growth, outdepth),  # unused, as in source
    }


# ------------------------------- forward pass -------------------------------- #

def translink_forward(params, x1, x2, x3, x4, pred, *, mxu_dtype=jnp.float32):
    """Inputs in NCHW (PyTorch convention); outputs returned in NCHW.

    mxu_dtype=jnp.bfloat16 selects the bf16 MXU path (v6e/v7x): folded weights
    are stored in bf16 and activations are cast at the dot; accumulation and
    all elementwise work stay f32.
    """
    N, _, H, W = x1.shape
    od = params["w1"].shape[1]
    assert H % 16 == 0 and W % 16 == 0, "spatial dims must be divisible by 16"
    assert x2.shape[2:] == (H // 2, W // 2)
    assert x3.shape[2:] == (H // 4, W // 4)
    assert x4.shape[2:] == (H // 8, W // 8)
    assert params["bn2"][0].shape[0] == od + x2.shape[1]

    # Host-side even/odd-H split (free contiguous reshape of NHWC) so the
    # H-direction pool is a plain VPU add in the kernel.
    x1e, x1o = _split_even_odd_rows(x1)
    x2e, x2o = _split_even_odd_rows(x2)
    x3e, x3o = _split_even_odd_rows(x3)
    x4e, x4o = _split_even_odd_rows(x4)

    (s1, b1), (s2, b2) = params["bn1"], params["bn2"]
    (s3, b3), (s4, b4) = params["bn3"], params["bn4"]
    w1, w2, w3 = params["w1"], params["w2"], params["w3"]

    W1, W2, W3, W4 = W, W // 2, W // 4, W // 8
    bb1,  wc1  = _fold_bn_conv(s1, b1, w1, W1, mxu_dtype)
    bb2a, wc2a = _fold_bn_conv(s2[:od], b2[:od], w2[:od], W2, mxu_dtype)
    bb2b, wc2b = _fold_bn_conv(s2[od:], b2[od:], w2[od:], W2, mxu_dtype)
    bb3a, wc3a = _fold_bn_conv(s3[:od], b3[:od], w3[:od], W3, mxu_dtype)
    bb3b, wc3b = _fold_bn_conv(s3[od:], b3[od:], w3[od:], W3, mxu_dtype)
    # NOTE: source uses self.conv3 (w3) with bn4 for res4 — reproduced here.
    bb4a, wc4a = _fold_bn_conv(s4[:od], b4[:od], w3[:od], W4, mxu_dtype)
    bb4b, wc4b = _fold_bn_conv(s4[od:], b4[od:], w3[od:], W4, mxu_dtype)

    Hp1, Wp1 = H // 2, W // 2
    Hp2, Wp2 = H // 4, W // 4
    Hp3, Wp3 = H // 8, W // 8
    Hp4, Wp4 = H // 16, W // 16

    # Single fused pallas_call: no grid, all operands VMEM-resident (a few
    # hundred KiB at this shape — far below the 32 MiB limit set below).
    r1f, r2f, r3f, r4f = pl.pallas_call(
        _translink_kernel,
        out_shape=(
            jax.ShapeDtypeStruct((N * Hp1, Wp1 * od), jnp.float32),
            jax.ShapeDtypeStruct((N * Hp2, Wp2 * od), jnp.float32),
            jax.ShapeDtypeStruct((N * Hp3, Wp3 * od), jnp.float32),
            jax.ShapeDtypeStruct((N * Hp4, Wp4 * od), jnp.float32),
        ),
        compiler_params=pltpu.CompilerParams(vmem_limit_bytes=32 * 1024 * 1024),
    )(x1e, x1o, x2e, x2o, x3e, x3o, x4e, x4o,
      bb1, bb2a, bb2b, bb3a, bb3b, bb4a, bb4b,
      wc1, wc2a, wc2b, wc3a, wc3b, wc4a, wc4b)

    def from_flat(rf, hp, wp):  # (N*Hp, Wp*Cout) -> NCHW
        return jnp.transpose(rf.reshape(N, hp, wp, od), (0, 3, 1, 2))

    return (from_flat(r1f, Hp1, Wp1), from_flat(r2f, Hp2, Wp2),
            from_flat(r3f, Hp3, Wp3), from_flat(r4f, Hp4, Wp4), pred)


# ------------------------------- pure-JAX reference --------------------------- #

def _ref_stage(x_nchw, scale, bias, w):
    z = jnp.maximum(x_nchw * scale[None, :, None, None] + bias[None, :, None, None], 0.0)
    y = jnp.einsum("nchw,cd->ndhw", z, w, precision=jax.lax.Precision.HIGHEST)
    n, d, h, wd = y.shape
    return y.reshape(n, d, h // 2, 2, wd // 2, 2).mean(axis=(3, 5))


def ref_forward(params, x1, x2, x3, x4, pred):
    s1, b1 = params["bn1"]
    res1 = _ref_stage(x1, s1, b1, params["w1"])
    s2, b2 = params["bn2"]
    res2 = _ref_stage(jnp.concatenate([res1, x2], axis=1), s2, b2, params["w2"])
    s3, b3 = params["bn3"]
    res3 = _ref_stage(jnp.concatenate([res2, x3], axis=1), s3, b3, params["w3"])
    s4, b4 = params["bn4"]
    res4 = _ref_stage(jnp.concatenate([res3, x4], axis=1), s4, b4, params["w3"])
    return res1, res2, res3, res4, pred


# ----------------------------------- main ------------------------------------ #

if __name__ == "__main__":
    indepth, outdepth, growth = 8, 8, 8
    N, H, W = 2, 16, 16

    key = jax.random.PRNGKey(0)
    kp, k1, k2, k3, k4, kpred = jax.random.split(key, 6)
    params = init_params(kp, indepth, outdepth, growth)

    # The BN-scale-into-weight fold (relu(s*x+b) = s*relu(x+b/s)) requires s>0;
    # check eagerly on the concrete params (true by construction here).
    for name in ("bn1", "bn2", "bn3", "bn4"):
        assert bool(jnp.all(params[name][0] > 0)), f"{name}: BN scale fold needs s > 0"

    x1 = jax.random.normal(k1, (N, indepth, H, W), dtype=jnp.float32)
    x2 = jax.random.normal(k2, (N, growth, H // 2, W // 2), dtype=jnp.float32)
    x3 = jax.random.normal(k3, (N, growth, H // 4, W // 4), dtype=jnp.float32)
    x4 = jax.random.normal(k4, (N, growth, H // 8, W // 8), dtype=jnp.float32)
    pred = jax.random.normal(kpred, (N, 10), dtype=jnp.float32)

    want = ref_forward(params, x1, x2, x3, x4, pred)

    # ---- f32 MXU path (v5e-safe default) ----
    fwd_f32 = jax.jit(functools.partial(translink_forward, mxu_dtype=jnp.float32))
    got_f32 = fwd_f32(params, x1, x2, x3, x4, pred)
    jax.block_until_ready(got_f32)
    for got, exp in zip(got_f32[:4], want[:4]):
        assert got.shape == exp.shape, (got.shape, exp.shape)
        assert jnp.allclose(got, exp, rtol=2e-3, atol=2e-3), \
            float(jnp.max(jnp.abs(got - exp)))
    assert jnp.array_equal(got_f32[4], pred)

    # ---- bf16 MXU path (v6e/v7x): f32 accumulation, f32 elementwise ----
    fwd_bf16 = jax.jit(functools.partial(translink_forward, mxu_dtype=jnp.bfloat16))
    got_bf16 = fwd_bf16(params, x1, x2, x3, x4, pred)
    jax.block_until_ready(got_bf16)
    for got, exp in zip(got_bf16[:4], want[:4]):
        assert got.shape == exp.shape, (got.shape, exp.shape)
        rel = float(jnp.linalg.norm(got - exp) / (jnp.linalg.norm(exp) + 1e-8))
        assert rel < 3e-2, rel   # bf16 operand rounding across 4 chained stages

    print("KERNEL_OK")
</pallas_src>

<mosaic_0001>
module attributes {stable_mosaic.version = 11 : i64} {
  func.func @_translink_kernel(%arg0: memref<16x128xf32, #tpu.memory_space<vmem>>, %arg1: memref<16x128xf32, #tpu.memory_space<vmem>>, %arg2: memref<8x64xf32, #tpu.memory_space<vmem>>, %arg3: memref<8x64xf32, #tpu.memory_space<vmem>>, %arg4: memref<4x32xf32, #tpu.memory_space<vmem>>, %arg5: memref<4x32xf32, #tpu.memory_space<vmem>>, %arg6: memref<2x16xf32, #tpu.memory_space<vmem>>, %arg7: memref<2x16xf32, #tpu.memory_space<vmem>>, %arg8: memref<1x128xf32, #tpu.memory_space<vmem>>, %arg9: memref<1x64xf32, #tpu.memory_space<vmem>>, %arg10: memref<1x64xf32, #tpu.memory_space<vmem>>, %arg11: memref<1x32xf32, #tpu.memory_space<vmem>>, %arg12: memref<1x32xf32, #tpu.memory_space<vmem>>, %arg13: memref<1x16xf32, #tpu.memory_space<vmem>>, %arg14: memref<1x16xf32, #tpu.memory_space<vmem>>, %arg15: memref<128x64xf32, #tpu.memory_space<vmem>>, %arg16: memref<64x32xf32, #tpu.memory_space<vmem>>, %arg17: memref<64x32xf32, #tpu.memory_space<vmem>>, %arg18: memref<32x16xf32, #tpu.memory_space<vmem>>, %arg19: memref<32x16xf32, #tpu.memory_space<vmem>>, %arg20: memref<16x8xf32, #tpu.memory_space<vmem>>, %arg21: memref<16x8xf32, #tpu.memory_space<vmem>>, %arg22: memref<16x64xf32, #tpu.memory_space<vmem>>, %arg23: memref<8x32xf32, #tpu.memory_space<vmem>>, %arg24: memref<4x16xf32, #tpu.memory_space<vmem>>, %arg25: memref<2x8xf32, #tpu.memory_space<vmem>>) attributes {dimension_semantics = [], scalar_prefetch = 0 : i64, scratch_operands = 0 : i64, tpu.core_type = #tpu.core_type<tc>} {
    %c0 = arith.constant 0 : index
    %c0_0 = arith.constant 0 : index
    %0 = vector.load %arg8[%c0, %c0_0] : memref<1x128xf32, #tpu.memory_space<vmem>>, vector<1x128xf32>
    %c0_1 = arith.constant 0 : index
    %c0_2 = arith.constant 0 : index
    %1 = vector.load %arg0[%c0_1, %c0_2] : memref<16x128xf32, #tpu.memory_space<vmem>>, vector<16x128xf32>
    %2 = vector.broadcast %0 : vector<1x128xf32> to vector<16x128xf32>
    %3 = arith.addf %1, %2 : vector<16x128xf32>
    %cst = arith.constant 0.000000e+00 : f32
    %4 = vector.broadcast %cst : f32 to vector<16x128xf32>
    %5 = arith.maximumf %3, %4 : vector<16x128xf32>
    %c0_3 = arith.constant 0 : index
    %c0_4 = arith.constant 0 : index
    %6 = vector.load %arg1[%c0_3, %c0_4] : memref<16x128xf32, #tpu.memory_space<vmem>>, vector<16x128xf32>
    %7 = vector.broadcast %0 : vector<1x128xf32> to vector<16x128xf32>
    %8 = arith.addf %6, %7 : vector<16x128xf32>
    %cst_5 = arith.constant 0.000000e+00 : f32
    %9 = vector.broadcast %cst_5 : f32 to vector<16x128xf32>
    %10 = arith.maximumf %8, %9 : vector<16x128xf32>
    %11 = arith.addf %5, %10 : vector<16x128xf32>
    %c0_6 = arith.constant 0 : index
    %c0_7 = arith.constant 0 : index
    %12 = vector.load %arg15[%c0_6, %c0_7] : memref<128x64xf32, #tpu.memory_space<vmem>>, vector<128x64xf32>
    %cst_8 = arith.constant dense<0.000000e+00> : vector<16x64xf32>
    %13 = tpu.matmul %11, %12, %cst_8 {dimension_numbers = #tpu.dot_dimension_numbers<[1], [0], [0], [1], [0, 0, 1, 1], [], []>} : vector<16x128xf32>, vector<128x64xf32>, vector<16x64xf32> -> vector<16x64xf32>
    %c0_9 = arith.constant 0 : index
    %c0_10 = arith.constant 0 : index
    %14 = vector.load %arg22[%c0_9, %c0_10] : memref<16x64xf32, #tpu.memory_space<vmem>>, vector<16x64xf32>
    tpu.vector_store %arg22[%c0_9, %c0_10], %13 {strides = array<i32>} : memref<16x64xf32, #tpu.memory_space<vmem>>, vector<16x64xf32>,
    %c0_11 = arith.constant 0 : index
    %c0_12 = arith.constant 0 : index
    %15 = vector.load %arg9[%c0_11, %c0_12] : memref<1x64xf32, #tpu.memory_space<vmem>>, vector<1x64xf32>
    %c0_13 = arith.constant 0 : index
    %c0_14 = arith.constant 0 : index
    %16 = tpu.strided_load %arg22[%c0_13, %c0_14] {strides = array<i32: 2, 1>} : memref<16x64xf32, #tpu.memory_space<vmem>>, vector<8x64xf32>
    %c1 = arith.constant 1 : index
    %c0_15 = arith.constant 0 : index
    %17 = tpu.strided_load %arg22[%c1, %c0_15] {strides = array<i32: 2, 1>} : memref<16x64xf32, #tpu.memory_space<vmem>>, vector<8x64xf32>
    %18 = vector.broadcast %15 : vector<1x64xf32> to vector<8x64xf32>
    %19 = arith.addf %16, %18 : vector<8x64xf32>
    %cst_16 = arith.constant 0.000000e+00 : f32
    %20 = vector.broadcast %cst_16 : f32 to vector<8x64xf32>
    %21 = arith.maximumf %19, %20 : vector<8x64xf32>
    %22 = vector.broadcast %15 : vector<1x64xf32> to vector<8x64xf32>
    %23 = arith.addf %17, %22 : vector<8x64xf32>
    %cst_17 = arith.constant 0.000000e+00 : f32
    %24 = vector.broadcast %cst_17 : f32 to vector<8x64xf32>
    %25 = arith.maximumf %23, %24 : vector<8x64xf32>
    %26 = arith.addf %21, %25 : vector<8x64xf32>
    %c0_18 = arith.constant 0 : index
    %c0_19 = arith.constant 0 : index
    %27 = vector.load %arg16[%c0_18, %c0_19] : memref<64x32xf32, #tpu.memory_space<vmem>>, vector<64x32xf32>
    %cst_20 = arith.constant dense<0.000000e+00> : vector<8x32xf32>
    %28 = tpu.matmul %26, %27, %cst_20 {dimension_numbers = #tpu.dot_dimension_numbers<[1], [0], [0], [1], [0, 0, 1, 1], [], []>} : vector<8x64xf32>, vector<64x32xf32>, vector<8x32xf32> -> vector<8x32xf32>
    %c0_21 = arith.constant 0 : index
    %c0_22 = arith.constant 0 : index
    %29 = vector.load %arg10[%c0_21, %c0_22] : memref<1x64xf32, #tpu.memory_space<vmem>>, vector<1x64xf32>
    %c0_23 = arith.constant 0 : index
    %c0_24 = arith.constant 0 : index
    %30 = vector.load %arg2[%c0_23, %c0_24] : memref<8x64xf32, #tpu.memory_space<vmem>>, vector<8x64xf32>
    %31 = vector.broadcast %29 : vector<1x64xf32> to vector<8x64xf32>
    %32 = arith.addf %30, %31 : vector<8x64xf32>
    %cst_25 = arith.constant 0.000000e+00 : f32
    %33 = vector.broadcast %cst_25 : f32 to vector<8x64xf32>
    %34 = arith.maximumf %32, %33 : vector<8x64xf32>
    %c0_26 = arith.constant 0 : index
    %c0_27 = arith.constant 0 : index
    %35 = vector.load %arg3[%c0_26, %c0_27] : memref<8x64xf32, #tpu.memory_space<vmem>>, vector<8x64xf32>
    %36 = vector.broadcast %29 : vector<1x64xf32> to vector<8x64xf32>
    %37 = arith.addf %35, %36 : vector<8x64xf32>
    %cst_28 = arith.constant 0.000000e+00 : f32
    %38 = vector.broadcast %cst_28 : f32 to vector<8x64xf32>
    %39 = arith.maximumf %37, %38 : vector<8x64xf32>
    %40 = arith.addf %34, %39 : vector<8x64xf32>
    %c0_29 = arith.constant 0 : index
    %c0_30 = arith.constant 0 : index
    %41 = vector.load %arg17[%c0_29, %c0_30] : memref<64x32xf32, #tpu.memory_space<vmem>>, vector<64x32xf32>
    %cst_31 = arith.constant dense<0.000000e+00> : vector<8x32xf32>
    %42 = tpu.matmul %40, %41, %cst_31 {dimension_numbers = #tpu.dot_dimension_numbers<[1], [0], [0], [1], [0, 0, 1, 1], [], []>} : vector<8x64xf32>, vector<64x32xf32>, vector<8x32xf32> -> vector<8x32xf32>
    %43 = arith.addf %28, %42 : vector<8x32xf32>
    %c0_32 = arith.constant 0 : index
    %c0_33 = arith.constant 0 : index
    %44 = vector.load %arg23[%c0_32, %c0_33] : memref<8x32xf32, #tpu.memory_space<vmem>>, vector<8x32xf32>
    tpu.vector_store %arg23[%c0_32, %c0_33], %43 {strides = array<i32>} : memref<8x32xf32, #tpu.memory_space<vmem>>, vector<8x32xf32>,
    %c0_34 = arith.constant 0 : index
    %c0_35 = arith.constant 0 : index
    %45 = vector.load %arg11[%c0_34, %c0_35] : memref<1x32xf32, #tpu.memory_space<vmem>>, vector<1x32xf32>
    %c0_36 = arith.constant 0 : index
    %c0_37 = arith.constant 0 : index
    %46 = tpu.strided_load %arg23[%c0_36, %c0_37] {strides = array<i32: 2, 1>} : memref<8x32xf32, #tpu.memory_space<vmem>>, vector<4x32xf32>
    %c1_38 = arith.constant 1 : index
    %c0_39 = arith.constant 0 : index
    %47 = tpu.strided_load %arg23[%c1_38, %c0_39] {strides = array<i32: 2, 1>} : memref<8x32xf32, #tpu.memory_space<vmem>>, vector<4x32xf32>
    %48 = vector.broadcast %45 : vector<1x32xf32> to vector<4x32xf32>
    %49 = arith.addf %46, %48 : vector<4x32xf32>
    %cst_40 = arith.constant 0.000000e+00 : f32
    %50 = vector.broadcast %cst_40 : f32 to vector<4x32xf32>
    %51 = arith.maximumf %49, %50 : vector<4x32xf32>
    %52 = vector.broadcast %45 : vector<1x32xf32> to vector<4x32xf32>
    %53 = arith.addf %47, %52 : vector<4x32xf32>
    %cst_41 = arith.constant 0.000000e+00 : f32
    %54 = vector.broadcast %cst_41 : f32 to vector<4x32xf32>
    %55 = arith.maximumf %53, %54 : vector<4x32xf32>
    %56 = arith.addf %51, %55 : vector<4x32xf32>
    %c0_42 = arith.constant 0 : index
    %c0_43 = arith.constant 0 : index
    %57 = vector.load %arg18[%c0_42, %c0_43] : memref<32x16xf32, #tpu.memory_space<vmem>>, vector<32x16xf32>
    %cst_44 = arith.constant dense<0.000000e+00> : vector<4x16xf32>
    %58 = tpu.matmul %56, %57, %cst_44 {dimension_numbers = #tpu.dot_dimension_numbers<[1], [0], [0], [1], [0, 0, 1, 1], [], []>} : vector<4x32xf32>, vector<32x16xf32>, vector<4x16xf32> -> vector<4x16xf32>
    %c0_45 = arith.constant 0 : index
    %c0_46 = arith.constant 0 : index
    %59 = vector.load %arg12[%c0_45, %c0_46] : memref<1x32xf32, #tpu.memory_space<vmem>>, vector<1x32xf32>
    %c0_47 = arith.constant 0 : index
    %c0_48 = arith.constant 0 : index
    %60 = vector.load %arg4[%c0_47, %c0_48] : memref<4x32xf32, #tpu.memory_space<vmem>>, vector<4x32xf32>
    %61 = vector.broadcast %59 : vector<1x32xf32> to vector<4x32xf32>
    %62 = arith.addf %60, %61 : vector<4x32xf32>
    %cst_49 = arith.constant 0.000000e+00 : f32
    %63 = vector.broadcast %cst_49 : f32 to vector<4x32xf32>
    %64 = arith.maximumf %62, %63 : vector<4x32xf32>
    %c0_50 = arith.constant 0 : index
    %c0_51 = arith.constant 0 : index
    %65 = vector.load %arg5[%c0_50, %c0_51] : memref<4x32xf32, #tpu.memory_space<vmem>>, vector<4x32xf32>
    %66 = vector.broadcast %59 : vector<1x32xf32> to vector<4x32xf32>
    %67 = arith.addf %65, %66 : vector<4x32xf32>
    %cst_52 = arith.constant 0.000000e+00 : f32
    %68 = vector.broadcast %cst_52 : f32 to vector<4x32xf32>
    %69 = arith.maximumf %67, %68 : vector<4x32xf32>
    %70 = arith.addf %64, %69 : vector<4x32xf32>
    %c0_53 = arith.constant 0 : index
    %c0_54 = arith.constant 0 : index
    %71 = vector.load %arg19[%c0_53, %c0_54] : memref<32x16xf32, #tpu.memory_space<vmem>>, vector<32x16xf32>
    %cst_55 = arith.constant dense<0.000000e+00> : vector<4x16xf32>
    %72 = tpu.matmul %70, %71, %cst_55 {dimension_numbers = #tpu.dot_dimension_numbers<[1], [0], [0], [1], [0, 0, 1, 1], [], []>} : vector<4x32xf32>, vector<32x16xf32>, vector<4x16xf32> -> vector<4x16xf32>
    %73 = arith.addf %58, %72 : vector<4x16xf32>
    %c0_56 = arith.constant 0 : index
    %c0_57 = arith.constant 0 : index
    %74 = vector.load %arg24[%c0_56, %c0_57] : memref<4x16xf32, #tpu.memory_space<vmem>>, vector<4x16xf32>
    tpu.vector_store %arg24[%c0_56, %c0_57], %73 {strides = array<i32>} : memref<4x16xf32, #tpu.memory_space<vmem>>, vector<4x16xf32>,
    %c0_58 = arith.constant 0 : index
    %c0_59 = arith.constant 0 : index
    %75 = vector.load %arg13[%c0_58, %c0_59] : memref<1x16xf32, #tpu.memory_space<vmem>>, vector<1x16xf32>
    %c0_60 = arith.constant 0 : index
    %c0_61 = arith.constant 0 : index
    %76 = tpu.strided_load %arg24[%c0_60, %c0_61] {strides = array<i32: 2, 1>} : memref<4x16xf32, #tpu.memory_space<vmem>>, vector<2x16xf32>
    %c1_62 = arith.constant 1 : index
    %c0_63 = arith.constant 0 : index
    %77 = tpu.strided_load %arg24[%c1_62, %c0_63] {strides = array<i32: 2, 1>} : memref<4x16xf32, #tpu.memory_space<vmem>>, vector<2x16xf32>
    %78 = vector.broadcast %75 : vector<1x16xf32> to vector<2x16xf32>
    %79 = arith.addf %76, %78 : vector<2x16xf32>
    %cst_64 = arith.constant 0.000000e+00 : f32
    %80 = vector.broadcast %cst_64 : f32 to vector<2x16xf32>
    %81 = arith.maximumf %79, %80 : vector<2x16xf32>
    %82 = vector.broadcast %75 : vector<1x16xf32> to vector<2x16xf32>
    %83 = arith.addf %77, %82 : vector<2x16xf32>
    %cst_65 = arith.constant 0.000000e+00 : f32
    %84 = vector.broadcast %cst_65 : f32 to vector<2x16xf32>
    %85 = arith.maximumf %83, %84 : vector<2x16xf32>
    %86 = arith.addf %81, %85 : vector<2x16xf32>
    %c0_66 = arith.constant 0 : index
    %c0_67 = arith.constant 0 : index
    %87 = vector.load %arg20[%c0_66, %c0_67] : memref<16x8xf32, #tpu.memory_space<vmem>>, vector<16x8xf32>
    %cst_68 = arith.constant dense<0.000000e+00> : vector<2x8xf32>
    %88 = tpu.matmul %86, %87, %cst_68 {dimension_numbers = #tpu.dot_dimension_numbers<[1], [0], [0], [1], [0, 0, 1, 1], [], []>} : vector<2x16xf32>, vector<16x8xf32>, vector<2x8xf32> -> vector<2x8xf32>
    %c0_69 = arith.constant 0 : index
    %c0_70 = arith.constant 0 : index
    %89 = vector.load %arg14[%c0_69, %c0_70] : memref<1x16xf32, #tpu.memory_space<vmem>>, vector<1x16xf32>
    %c0_71 = arith.constant 0 : index
    %c0_72 = arith.constant 0 : index
    %90 = vector.load %arg6[%c0_71, %c0_72] : memref<2x16xf32, #tpu.memory_space<vmem>>, vector<2x16xf32>
    %91 = vector.broadcast %89 : vector<1x16xf32> to vector<2x16xf32>
    %92 = arith.addf %90, %91 : vector<2x16xf32>
    %cst_73 = arith.constant 0.000000e+00 : f32
    %93 = vector.broadcast %cst_73 : f32 to vector<2x16xf32>
    %94 = arith.maximumf %92, %93 : vector<2x16xf32>
    %c0_74 = arith.constant 0 : index
    %c0_75 = arith.constant 0 : index
    %95 = vector.load %arg7[%c0_74, %c0_75] : memref<2x16xf32, #tpu.memory_space<vmem>>, vector<2x16xf32>
    %96 = vector.broadcast %89 : vector<1x16xf32> to vector<2x16xf32>
    %97 = arith.addf %95, %96 : vector<2x16xf32>
    %cst_76 = arith.constant 0.000000e+00 : f32
    %98 = vector.broadcast %cst_76 : f32 to vector<2x16xf32>
    %99 = arith.maximumf %97, %98 : vector<2x16xf32>
    %100 = arith.addf %94, %99 : vector<2x16xf32>
    %c0_77 = arith.constant 0 : index
    %c0_78 = arith.constant 0 : index
    %101 = vector.load %arg21[%c0_77, %c0_78] : memref<16x8xf32, #tpu.memory_space<vmem>>, vector<16x8xf32>
    %cst_79 = arith.constant dense<0.000000e+00> : vector<2x8xf32>
    %102 = tpu.matmul %100, %101, %cst_79 {dimension_numbers = #tpu.dot_dimension_numbers<[1], [0], [0], [1], [0, 0, 1, 1], [], []>} : vector<2x16xf32>, vector<16x8xf32>, vector<2x8xf32> -> vector<2x8xf32>
    %103 = arith.addf %88, %102 : vector<2x8xf32>
    %c0_80 = arith.constant 0 : index
    %c0_81 = arith.constant 0 : index
    %104 = vector.load %arg25[%c0_80, %c0_81] : memref<2x8xf32, #tpu.memory_space<vmem>>, vector<2x8xf32>
    tpu.vector_store %arg25[%c0_80, %c0_81], %103 {strides = array<i32>} : memref<2x8xf32, #tpu.memory_space<vmem>>, vector<2x8xf32>,
    return
  }
}

</mosaic_0001>

<bundles_post_ra>
// kernel: div.7
= control target key start
LH: loop header
LB: loop body
LE: loop exit
PB: predicated region body
PF: predicated region fallthrough
CT: control target
= control target key end

     0   :  { %s37_s0 = inlined_call_operand.vmem [shape: f32[8], index: 0, kind: input, shape index: {}]   ;;  %s38_s1 = inlined_call_operand.vmem [shape: f32[8], index: 1, kind: input, shape index: {}]   ;;  %s39_s2 = inlined_call_operand.vmem [shape: f32[8], index: 2, kind: output, shape index: {}]  }
   0x1   :  { %v4_v0 = vld [vmem:[%s38_s1] sm:$0x1] }
   0x2   :  { %11 = vrcp.f32 %v4_v0  ;;  %v3_v1 = vld [vmem:[%s37_s0] sm:$0x1] }
   0xc   :  { %v12_v2 = vpop.eup %11 }
   0xd   :  { %v8_v3 = vmul.f32 %v12_v2, %v3_v1 }
   0xf   :  { %10 = vst [vmem:[%s39_s2] sm:$0x1] %v8_v3 }

// kernel: tile.38
= control target key start
LH: loop header
LB: loop body
LE: loop exit
PB: predicated region body
PF: predicated region fallthrough
CT: control target
= control target key end

     0   :  { %s28_s0 = inlined_call_operand.vmem [shape: f32[8], index: 0, kind: input, shape index: {}]   ;;  %s29_s1 = inlined_call_operand.vmem [shape: f32[16,8], index: 1, kind: output, shape index: {}]  }
   0x1   :  { %v4_v0 = vld [vmem:[%s28_s0] ss:$0 sm:$0xff] }
   0x2   :  { %5 = vst [vmem:[%s29_s1] sm:$0xff] %v4_v0  ;;  %8 = vst [vmem:[%s29_s1 + $0x8] sm:$0xff] %v4_v0 }

// kernel: tile.39
= control target key start
LH: loop header
LB: loop body
LE: loop exit
PB: predicated region body
PF: predicated region fallthrough
CT: control target
= control target key end

     0   :  { %s131_s10 = smov 120   ;;  %s132_s11 = smov 104   ;;  %vm3_vm0 = vcmask 64512   ;;  %vm9_vm1 = vcmask 1048512   ;;  %vm15_vm2 = vcmask 982912   ;;  %vm21_vm3 = vcmask 917312   ;;  %s207_s0 = inlined_call_operand.vmem [shape: f32[16,8], index: 0, kind: input, shape index: {}]   ;;  %s208_s1 = inlined_call_operand.vmem [shape: f32[1,128], index: 1, kind: output, shape index: {}]  }
   0x1   :  { %v101_v0 = vld [vmem:[%s207_s0 + $0xf] sm:$0x1]   ;;  %v103_v1 = vld [vmem:[%s207_s0 + $0xd] sm:$0x1]   ;;  %v102_v2 = vld [vmem:[%s207_s0 + $0xe] sm:$0x1]  }
   0x2   :  { %7 = vrot.lane.b32.xlu0 %v101_v0, %s131_s10  ;;  %19 = vrot.lane.b32.xlu1 %v103_v1, %s132_s11  ;;  %v104_v3 = vld [vmem:[%s207_s0 + $0xc] sm:$0x1]   ;;  %s133_s16 = smov 112   ;;  %s134_s17 = smov 96   ;;  %v105_v4 = vld [vmem:[%s207_s0 + $0xb] sm:$0x1]  }
   0x3   :  { %v106_v5 = vld [vmem:[%s207_s0 + $0xa] sm:$0x1]   ;;  %v2_v6 = vld [vmem:[%s207_s0] sm:$0x1]   ;;  %s135_s24 = smov 88   ;;  %s136_s25 = smov 80  }
   0x4   :  { %4 = vst.msk [vmem:[#allocation0] sm:$0x1] %vm3_vm0, %v2_v6   ;;  %v107_v7 = vld [vmem:[%s207_s0 + $0x9] sm:$0x1]   ;;  %v108_v8 = vld [vmem:[%s207_s0 + $0x8] sm:$0x1]  }
   0x5   :  { %s137_s30 = smov 72   ;;  %s138_s2 = smov 64   ;;  %v109_v9 = vld [vmem:[%s207_s0 + $0x7] sm:$0x1]   ;;  %v110_v10 = vld [vmem:[%s207_s0 + $0x6] sm:$0x1]  }
   0x6   :  { %13 = vrot.lane.b32.xlu0 %v102_v2, %s133_s16  ;;  %25 = vrot.lane.b32.xlu1 %v104_v3, %s134_s17  ;;  %s139_s7 = smov 56   ;;  %s140_s8 = smov 48   ;;  %v111_v11 = vld [vmem:[%s207_s0 + $0x5] sm:$0x1]   ;;  %v112_v12 = vld [vmem:[%s207_s0 + $0x4] sm:$0x1]  }
   0x7   :  { %s141_s13 = smov 40   ;;  %s142_s14 = smov 32   ;;  %v113_v13 = vld [vmem:[%s207_s0 + $0x3] sm:$0x1]   ;;  %v114_v14 = vld [vmem:[%s207_s0 + $0x2] sm:$0x1]  }
   0x8   :  { %s143_s19 = smov 24   ;;  %s144_s20 = smov 16   ;;  %v115_v15 = vld [vmem:[%s207_s0 + $0x1] sm:$0x1]   ;;  %vm27_vm4 = vcmask 851712   ;;  %vm33_vm5 = vcmask 786112  }
   0x9   :  { %s145_s0 = smov 8   ;;  %vm39_vm6 = vcmask 720512   ;;  %vm45_vm7 = vcmask 654912   ;;  %vm51_vm8 = vcmask 589312   ;;  %vm57_vm9 = vcmask 523712  }
   0xa   :  { %31 = vrot.lane.b32.xlu0 %v105_v4, %s135_s24  ;;  %37 = vrot.lane.b32.xlu1 %v106_v5, %s136_s25  ;;  %vm63_vm10 = vcmask 458112   ;;  %vm69_vm11 = vcmask 392512   ;;  %vm75_vm12 = vcmask 326912   ;;  %vm81_vm13 = vcmask 261312  }
   0xb   :  { %vm87_vm14 = vcmask 195712   ;;  %vm93_vm15 = vcmask 130112  }
   0xe   :  { %43 = vrot.lane.b32.xlu0 %v107_v7, %s137_s30  ;;  %49 = vrot.lane.b32.xlu1 %v108_v8, %s138_s2 }
  0x12   :  { %55 = vrot.lane.b32.xlu0 %v109_v9, %s139_s7  ;;  %61 = vrot.lane.b32.xlu1 %v110_v10, %s140_s8 }
  0x16   :  { %67 = vrot.lane.b32.xlu0 %v111_v11, %s141_s13  ;;  %73 = vrot.lane.b32.xlu1 %v112_v12, %s142_s14 }
  0x1a   :  { %79 = vrot.lane.b32.xlu0 %v113_v13, %s143_s19  ;;  %85 = vrot.lane.b32.xlu1 %v114_v14, %s144_s20 }
  0x1e   :  { %91 = vrot.lane.b32.xlu0 %v115_v15, %s145_s0 }
  0x74   :  { %v8_v16 = vpop.permute.xlu0 %7   ;;  %v20_v17 = vpop.permute.xlu1 %19  }
  0x75   :  { %10 = vst.msk [vmem:[#allocation0] sm:$0x1] %vm9_vm1, %v8_v16  }
  0x78   :  { %v14_v18 = vpop.permute.xlu0 %13   ;;  %v26_v19 = vpop.permute.xlu1 %25  }
  0x79   :  { %16 = vst.msk [vmem:[#allocation0] sm:$0x1] %vm15_vm2, %v14_v18  }
  0x7a   :  { %22 = vst.msk [vmem:[#allocation0] sm:$0x1] %vm21_vm3, %v20_v17  }
  0x7b   :  { %28 = vst.msk [vmem:[#allocation0] sm:$0x1] %vm27_vm4, %v26_v19  }
  0x7c   :  { %v32_v20 = vpop.permute.xlu0 %31   ;;  %v38_v21 = vpop.permute.xlu1 %37  }
  0x7d   :  { %34 = vst.msk [vmem:[#allocation0] sm:$0x1] %vm33_vm5, %v32_v20  }
  0x7e   :  { %40 = vst.msk [vmem:[#allocation0] sm:$0x1] %vm39_vm6, %v38_v21  }
  0x80   :  { %v44_v22 = vpop.permute.xlu0 %43   ;;  %v50_v23 = vpop.permute.xlu1 %49  }
  0x81   :  { %46 = vst.msk [vmem:[#allocation0] sm:$0x1] %vm45_vm7, %v44_v22  }
  0x82   :  { %52 = vst.msk [vmem:[#allocation0] sm:$0x1] %vm51_vm8, %v50_v23  }
  0x84   :  { %v56_v24 = vpop.permute.xlu0 %55   ;;  %v62_v25 = vpop.permute.xlu1 %61  }
  0x85   :  { %58 = vst.msk [vmem:[#allocation0] sm:$0x1] %vm57_vm9, %v56_v24  }
  0x86   :  { %64 = vst.msk [vmem:[#allocation0] sm:$0x1] %vm63_vm10, %v62_v25  }
  0x88   :  { %v68_v26 = vpop.permute.xlu0 %67   ;;  %v74_v27 = vpop.permute.xlu1 %73  }
  0x89   :  { %70 = vst.msk [vmem:[#allocation0] sm:$0x1] %vm69_vm11, %v68_v26  }
  0x8a   :  { %76 = vst.msk [vmem:[#allocation0] sm:$0x1] %vm75_vm12, %v74_v27  }
  0x8c   :  { %v80_v28 = vpop.permute.xlu0 %79   ;;  %v86_v29 = vpop.permute.xlu1 %85  }
  0x8d   :  { %82 = vst.msk [vmem:[#allocation0] sm:$0x1] %vm81_vm13, %v80_v28  }
  0x8e   :  { %88 = vst.msk [vmem:[#allocation0] sm:$0x1] %vm87_vm14, %v86_v29  }
  0x90   :  { %v92_v30 = vpop.permute.xlu0 %91  }
  0x91   :  { %94 = vst.msk [vmem:[#allocation0] sm:$0x1] %vm93_vm15, %v92_v30  }
  0x98   :  { %v98_v31 = vld [vmem:[#allocation0] sm:$0x1] }
  0x99   :  { %100 = vst [vmem:[%s208_s1] sm:$0x1] %v98_v31 }

// kernel: tile.43
= control target key start
LH: loop header
LB: loop body
LE: loop exit
PB: predicated region body
PF: predicated region fallthrough
CT: control target
= control target key end

     0   :  { %s22_s0 = inlined_call_operand.vmem [shape: f32[8], index: 0, kind: input, shape index: {}]   ;;  %s23_s1 = inlined_call_operand.vmem [shape: f32[8,8], index: 1, kind: output, shape index: {}]  }
   0x1   :  { %v4_v0 = vld [vmem:[%s22_s0] ss:$0 sm:$0xff] }
   0x2   :  { %5 = vst [vmem:[%s23_s1] sm:$0xff] %v4_v0 }

// kernel: tile.44
= control target key start
LH: loop header
LB: loop body
LE: loop exit
PB: predicated region body
PF: predicated region fallthrough
CT: control target
= control target key end

     0   :  { %s67_s10 = smov 56   ;;  %s68_s11 = smov 40   ;;  %vm3_vm0 = vcmask 64512   ;;  %vm9_vm1 = vcmask 523712   ;;  %vm15_vm2 = vcmask 458112   ;;  %vm21_vm3 = vcmask 392512   ;;  %s111_s0 = inlined_call_operand.vmem [shape: f32[8,8], index: 0, kind: input, shape index: {}]   ;;  %s112_s1 = inlined_call_operand.vmem [shape: f32[1,64], index: 1, kind: output, shape index: {}]  }
   0x1   :  { %v53_v0 = vld [vmem:[%s111_s0 + $0x7] sm:$0x1]   ;;  %v55_v1 = vld [vmem:[%s111_s0 + $0x5] sm:$0x1]   ;;  %v54_v2 = vld [vmem:[%s111_s0 + $0x6] sm:$0x1]  }
   0x2   :  { %7 = vrot.lane.b32.xlu0 %v53_v0, %s67_s10  ;;  %19 = vrot.lane.b32.xlu1 %v55_v1, %s68_s11  ;;  %v56_v3 = vld [vmem:[%s111_s0 + $0x4] sm:$0x1]   ;;  %v2_v4 = vld [vmem:[%s111_s0] sm:$0x1]   ;;  %s69_s18 = smov 48   ;;  %s70_s19 = smov 32  }
   0x3   :  { %4 = vst.msk [vmem:[#allocation0] sm:$0x1] %vm3_vm0, %v2_v4   ;;  %v57_v5 = vld [vmem:[%s111_s0 + $0x3] sm:$0x1]   ;;  %v58_v6 = vld [vmem:[%s111_s0 + $0x2] sm:$0x1]  }
   0x4   :  { %s71_s24 = smov 24   ;;  %s72_s25 = smov 16   ;;  %v59_v7 = vld [vmem:[%s111_s0 + $0x1] sm:$0x1]   ;;  %vm27_vm4 = vcmask 326912   ;;  %vm33_vm5 = vcmask 261312  }
   0x5   :  { %s73_s0 = smov 8   ;;  %vm39_vm6 = vcmask 195712   ;;  %vm45_vm7 = vcmask 130112  }
   0x6   :  { %13 = vrot.lane.b32.xlu0 %v54_v2, %s69_s18  ;;  %25 = vrot.lane.b32.xlu1 %v56_v3, %s70_s19 }
   0xa   :  { %31 = vrot.lane.b32.xlu0 %v57_v5, %s71_s24  ;;  %37 = vrot.lane.b32.xlu1 %v58_v6, %s72_s25 }
   0xe   :  { %43 = vrot.lane.b32.xlu0 %v59_v7, %s73_s0 }
  0x74   :  { %v8_v8 = vpop.permute.xlu0 %7   ;;  %v20_v9 = vpop.permute.xlu1 %19  }
  0x75   :  { %10 = vst.msk [vmem:[#allocation0] sm:$0x1] %vm9_vm1, %v8_v8  }
  0x78   :  { %v14_v10 = vpop.permute.xlu0 %13   ;;  %v26_v11 = vpop.permute.xlu1 %25  }
  0x79   :  { %16 = vst.msk [vmem:[#allocation0] sm:$0x1] %vm15_vm2, %v14_v10  }
  0x7a   :  { %22 = vst.msk [vmem:[#allocation0] sm:$0x1] %vm21_vm3, %v20_v9  }
  0x7b   :  { %28 = vst.msk [vmem:[#allocation0] sm:$0x1] %vm27_vm4, %v26_v11  }
  0x7c   :  { %v32_v12 = vpop.permute.xlu0 %31   ;;  %v38_v13 = vpop.permute.xlu1 %37  }
  0x7d   :  { %34 = vst.msk [vmem:[#allocation0] sm:$0x1] %vm33_vm5, %v32_v12  }
  0x7e   :  { %40 = vst.msk [vmem:[#allocation0] sm:$0x1] %vm39_vm6, %v38_v13  }
  0x80   :  { %v44_v14 = vpop.permute.xlu0 %43  }
  0x81   :  { %46 = vst.msk [vmem:[#allocation0] sm:$0x1] %vm45_vm7, %v44_v14  }
  0x88   :  { %v50_v15 = vld [vmem:[#allocation0] sm:$0x1] }
  0x89   :  { %52 = vst [vmem:[%s112_s1] sm:$0x1] %v50_v15 }

// kernel: tile.53
= control target key start
LH: loop header
LB: loop body
LE: loop exit
PB: predicated region body
PF: predicated region fallthrough
CT: control target
= control target key end

     0   :  { %s22_s0 = inlined_call_operand.vmem [shape: f32[8], index: 0, kind: input, shape index: {}]   ;;  %s23_s1 = inlined_call_operand.vmem [shape: f32[4,8], index: 1, kind: output, shape index: {}]  }
   0x1   :  { %v4_v0 = vld [vmem:[%s22_s0] ss:$0 sm:$0xff] }
   0x2   :  { %5 = vst [vmem:[%s23_s1] sm:$0xf] %v4_v0 }

// kernel: tile.54
= control target key start
LH: loop header
LB: loop body
LE: loop exit
PB: predicated region body
PF: predicated region fallthrough
CT: control target
= control target key end

     0   :  { %vm7_vm0 = vcmask 64512   ;;  %s37_s8 = smov 8   ;;  %s38_s9 = smov 16   ;;  %vm13_vm1 = vcmask 261312   ;;  %vm19_vm2 = vcmask 195712   ;;  %vm25_vm3 = vcmask 130112   ;;  %s55_s0 = inlined_call_operand.vmem [shape: f32[4,8], index: 0, kind: input, shape index: {}]   ;;  %s56_s1 = inlined_call_operand.vmem [shape: f32[1,32], index: 1, kind: output, shape index: {}]  }
   0x1   :  { %v4_v0 = vld [vmem:[%s55_s0] sm:$0xf]  ;;  %s36_s0 = smov 24  }
   0x2   :  { %5 = vst [vmem:[#allocation1] sm:$0xf] %v4_v0 }
   0x9   :  { %v10_v1 = vld [vmem:[#allocation1 + $0x3] sm:$0x1]   ;;  %v22_v2 = vld [vmem:[#allocation1 + $0x1] sm:$0x1]   ;;  %v6_v3 = vld [vmem:[#allocation1] sm:$0x1]  }
   0xa   :  { %11 = vrot.lane.b32.xlu0 %v10_v1, %s36_s0  ;;  %23 = vrot.lane.b32.xlu1 %v22_v2, %s37_s8  ;;  %v16_v4 = vld [vmem:[#allocation1 + $0x2] sm:$0x1]   ;;  %8 = vst.msk [vmem:[#allocation0] sm:$0x1] %vm7_vm0, %v6_v3  }
   0xe   :  { %17 = vrot.lane.b32.xlu0 %v16_v4, %s38_s9 }
  0x7c   :  { %v12_v5 = vpop.permute.xlu0 %11   ;;  %v24_v6 = vpop.permute.xlu1 %23  }
  0x7d   :  { %14 = vst.msk [vmem:[#allocation0] sm:$0x1] %vm13_vm1, %v12_v5  }
  0x80   :  { %v18_v7 = vpop.permute.xlu0 %17  }
  0x81   :  { %20 = vst.msk [vmem:[#allocation0] sm:$0x1] %vm19_vm2, %v18_v7  }
  0x82   :  { %26 = vst.msk [vmem:[#allocation0] sm:$0x1] %vm25_vm3, %v24_v6  }
  0x89   :  { %v30_v8 = vld [vmem:[#allocation0] sm:$0x1] }
  0x8a   :  { %32 = vst [vmem:[%s56_s1] sm:$0x1] %v30_v8 }

// kernel: tile.64
= control target key start
LH: loop header
LB: loop body
LE: loop exit
PB: predicated region body
PF: predicated region fallthrough
CT: control target
= control target key end

     0   :  { %vm7_vm0 = vcmask 64512   ;;  %vm13_vm1 = vcmask 130112   ;;  %s39_s0 = inlined_call_operand.vmem [shape: f32[2,8], index: 0, kind: input, shape index: {}]   ;;  %s40_s1 = inlined_call_operand.vmem [shape: f32[1,16], index: 1, kind: output, shape index: {}]  }
   0x1   :  { %v4_v0 = vld [vmem:[%s39_s0] sm:$0x3]  ;;  %s22_s0 = smov 8  }
   0x2   :  { %5 = vst [vmem:[#allocation1] sm:$0x3] %v4_v0 }
   0x9   :  { %v10_v1 = vld [vmem:[#allocation1 + $0x1] sm:$0x1]   ;;  %v6_v2 = vld [vmem:[#allocation1] sm:$0x1]  }
   0xa   :  { %11 = vrot.lane.b32.xlu0 %v10_v1, %s22_s0  ;;  %8 = vst.msk [vmem:[#allocation0] sm:$0x1] %vm7_vm0, %v6_v2  }
  0x7c   :  { %v12_v3 = vpop.permute.xlu0 %11  }
  0x7d   :  { %14 = vst.msk [vmem:[#allocation0] sm:$0x1] %vm13_vm1, %v12_v3  }
  0x84   :  { %v18_v4 = vld [vmem:[#allocation0] sm:$0x1] }
  0x85   :  { %20 = vst [vmem:[%s40_s1] sm:$0x1] %v18_v4 }

// kernel: tile.63
= control target key start
LH: loop header
LB: loop body
LE: loop exit
PB: predicated region body
PF: predicated region fallthrough
CT: control target
= control target key end

     0   :  { %s22_s0 = inlined_call_operand.vmem [shape: f32[8], index: 0, kind: input, shape index: {}]   ;;  %s23_s1 = inlined_call_operand.vmem [shape: f32[2,8], index: 1, kind: output, shape index: {}]  }
   0x1   :  { %v4_v0 = vld [vmem:[%s22_s0] ss:$0 sm:$0xff] }
   0x2   :  { %5 = vst [vmem:[%s23_s1] sm:$0x3] %v4_v0 }

// kernel: translink_forward.1
= control target key start
LH: loop header
LB: loop body
LE: loop exit
PB: predicated region body
PF: predicated region fallthrough
CT: control target
= control target key end

     0   :  { %s1456_s0 = inlined_call_operand.vmem [shape: f32[16,128], index: 0, kind: input, shape index: {}]   ;;  %s1457_s1 = inlined_call_operand.vmem [shape: f32[16,128], index: 1, kind: input, shape index: {}]   ;;  %s1458_s2 = inlined_call_operand.vmem [shape: f32[8,64], index: 2, kind: input, shape index: {}]   ;;  %s1459_s3 = inlined_call_operand.vmem [shape: f32[8,64], index: 3, kind: input, shape index: {}]   ;;  %s1460_s4 = inlined_call_operand.vmem [shape: f32[4,32], index: 4, kind: input, shape index: {}]   ;;  %s1461_s5 = inlined_call_operand.vmem [shape: f32[4,32], index: 5, kind: input, shape index: {}]   ;;  %s1462_s6 = inlined_call_operand.vmem [shape: f32[2,16], index: 6, kind: input, shape index: {}]   ;;  %s1463_s7 = inlined_call_operand.vmem [shape: f32[2,16], index: 7, kind: input, shape index: {}]   ;;  %s1464_s8 = inlined_call_operand.vmem [shape: f32[1,128], index: 8, kind: input, shape index: {}]   ;;  %s1465_s9 = inlined_call_operand.vmem [shape: f32[1,64], index: 9, kind: input, shape index: {}]   ;;  %s1466_s10 = inlined_call_operand.vmem [shape: f32[1,64], index: 10, kind: input, shape index: {}]   ;;  %s1467_s11 = inlined_call_operand.vmem [shape: f32[1,32], index: 11, kind: input, shape index: {}]   ;;  %s1468_s12 = inlined_call_operand.vmem [shape: f32[1,32], index: 12, kind: input, shape index: {}]   ;;  %s1469_s13 = inlined_call_operand.vmem [shape: f32[1,16], index: 13, kind: input, shape index: {}]   ;;  %s1470_s14 = inlined_call_operand.vmem [shape: f32[1,16], index: 14, kind: input, shape index: {}]   ;;  %s1471_s15 = inlined_call_operand.vmem [shape: f32[128,64], index: 15, kind: input, shape index: {}]   ;;  %s1472_s16 = inlined_call_operand.vmem [shape: f32[64,32], index: 16, kind: input, shape index: {}]   ;;  %s1473_s17 = inlined_call_operand.vmem [shape: f32[64,32], index: 17, kind: input, shape index: {}]   ;;  %s1474_s18 = inlined_call_operand.vmem [shape: f32[32,16], index: 18, kind: input, shape index: {}]   ;;  %s1475_s19 = inlined_call_operand.vmem [shape: f32[32,16], index: 19, kind: input, shape index: {}]   ;;  %s1476_s20 = inlined_call_operand.vmem [shape: f32[16,8], index: 20, kind: input, shape index: {}]   ;;  %s1477_s21 = inlined_call_operand.vmem [shape: f32[16,8], index: 21, kind: input, shape index: {}]   ;;  %s1478_s22 = inlined_call_operand.vmem [shape: f32[16,64], index: 22, kind: output, shape index: {0}]   ;;  %s1479_s23 = inlined_call_operand.vmem [shape: f32[8,32], index: 23, kind: output, shape index: {1}]   ;;  %s1480_s24 = inlined_call_operand.vmem [shape: f32[4,16], index: 24, kind: output, shape index: {2}]   ;;  %s1481_s25 = inlined_call_operand.hbm [shape: f32[2,8], index: 25, kind: output, shape index: {3}]  }
   0x1   :  { %1484 = sst [smem:[#allocation5_spill]] %s1456_s0 }
   0x2   :  { %1485 = sst [smem:[#allocation6_spill]] %s1457_s1 }
   0x3   :  { %1486 = sst [smem:[#allocation7_spill]] %s1458_s2 }
   0x4   :  { %1487 = sst [smem:[#allocation8_spill]] %s1459_s3 }
   0x5   :  { %1488 = sst [smem:[#allocation9_spill]] %s1460_s4 }
   0x6   :  { %1489 = sst [smem:[#allocation10_spill]] %s1461_s5 }
   0x7   :  { %1490 = sst [smem:[#allocation11_spill]] %s1462_s6 }
   0x8   :  { %1491 = sst [smem:[#allocation12_spill]] %s1463_s7 }
   0x9   :  { %1492 = sst [smem:[#allocation13_spill]] %s1464_s8 }
   0xa   :  { %1493 = sst [smem:[#allocation14_spill]] %s1465_s9 }
   0xb   :  { %v97_v0 = vld [vmem:[%s1471_s15] sm:$0xff]  ;;  %v98_v1 = vld [vmem:[%s1471_s15 + $0x8] sm:$0xff]  ;;  %v99_v2 = vld [vmem:[%s1471_s15 + $0x10] sm:$0xff]  ;;  %v1062_v5 = vmov 0.0|0.0   ;;  %s1494_s0 = sld [smem:[#allocation13_spill]]  ;;  %s1496_s27 = sld [smem:[#allocation6_spill]] }
   0xc   :  { %v954_v3 = vpack.c.bf16 %v98_v1, %v97_v0  ;;  %v100_v4 = vld [vmem:[%s1471_s15 + $0x18] sm:$0xff]  ;;  %986 = vmatprep.subr.bf16.mxu1 %v1062_v5  ;;  %v101_v7 = vld [vmem:[%s1471_s15 + $0x20] sm:$0xff]  ;;  %v102_v8 = vld [vmem:[%s1471_s15 + $0x28] sm:$0xff]  ;;  %s1495_s6 = sld [smem:[#allocation5_spill]] }
   0xd   :  { %v958_v6 = vpack.c.bf16 %v100_v4, %v99_v2  ;;  %v962_v9 = vpack.c.bf16 %v102_v8, %v101_v7  ;;  %v103_v12 = vld [vmem:[%s1471_s15 + $0x30] sm:$0xff]  ;;  %v104_v13 = vld [vmem:[%s1471_s15 + $0x38] sm:$0xff]  ;;  %v228_v17 = vld [vmem:[%s1473_s17] sm:$0xff] }
   0xe   :  { %955 = vmatprep.subr.bf16.mxu0 %v954_v3  ;;  %v229_v18 = vld [vmem:[%s1473_s17 + $0x8] sm:$0xff]  ;;  %v230_v19 = vld [vmem:[%s1473_s17 + $0x10] sm:$0xff]  ;;  %v231_v22 = vld [vmem:[%s1473_s17 + $0x18] sm:$0xff]  ;;  %v966_v23 = vpack.c.bf16 %v104_v13, %v103_v12 }
   0xf   :  { %957 = vmatpush3.bf16.msra.mxu0 %v954_v3  ;;  %v987_v21 = vpack.c.bf16 %v229_v18, %v228_v17  ;;  %v105_v25 = vld [vmem:[%s1471_s15 + $0x40] sm:$0xff]  ;;  %v106_v26 = vld [vmem:[%s1471_s15 + $0x48] sm:$0xff]  ;;  %v990_v27 = vpack.c.bf16 %v231_v22, %v230_v19 }
  0x10   :  { %959 = vmatprep.subr.bf16.mxu0 %v958_v6 }
  0x11   :  { %v777_v10 = vld [vmem:[%s1494_s0] ss:$0 sm:$0xff]  ;;  %988 = vmatpush3.bf16.msra.mxu1 %v987_v21 }
  0x12   :  { %v77_v11 = vld [vmem:[%s1495_s6] sm:$0xff] }
  0x13   :  { %v85_v14 = vadd.f32 %v777_v10, %v77_v11  ;;  %v89_v15 = vld [vmem:[%s1496_s27] sm:$0xff]  ;;  %961 = vmatpush3.bf16.msra.mxu0 %v958_v6 }
  0x14   :  { %v91_v16 = vadd.f32 %v777_v10, %v89_v15  ;;  %963 = vmatprep.subr.bf16.mxu0 %v962_v9 }
  0x15   :  { %v87_v20 = vmax.f32 %v85_v14, 0.0 }
  0x16   :  { %v93_v24 = vmax.f32 %v91_v16, 0.0 }
  0x17   :  { %31 = vsyncpa [#allocation3], 0  ;;  %989 = vmatprep.subr.bf16.mxu1 %v1062_v5  ;;  %v232_v29 = vld [vmem:[%s1473_s17 + $0x20] sm:$0xff]  ;;  %v233_v30 = vld [vmem:[%s1473_s17 + $0x28] sm:$0xff]  ;;  %965 = vmatpush3.bf16.msra.mxu0 %v962_v9  ;;  %v970_v31 = vpack.c.bf16 %v106_v26, %v105_v25  ;;  %s1497_s26 = sld [smem:[#allocation7_spill]]  ;;  %s1498_s4 = sld [smem:[#allocation8_spill]] }
  0x18   :  { %v95_v28 = vadd.f32 %v93_v24, %v87_v20  ;;  %967 = vmatprep.subr.bf16.mxu0 %v966_v23  ;;  %v107_v32 = vld [vmem:[%s1471_s15 + $0x50] sm:$0xff]  ;;  %v108_v33 = vld [vmem:[%s1471_s15 + $0x58] sm:$0xff]  ;;  %991 = vmatpush3.bf16.msra.mxu1 %v990_v27  ;;  %v993_v34 = vpack.c.bf16 %v233_v30, %v232_v29  ;;  %v109_v38 = vld [vmem:[%s1471_s15 + $0x60] sm:$0xff]  ;;  %vm188_vm0 = vcmask 523264   ;;  %vm1063_vm1 = vmmov 0   ;;  %s1499_s2 = sld [smem:[#allocation14_spill]] }
  0x19   :  { %992 = vmatprep.subr.bf16.mxu1 %v1062_v5  ;;  %v234_v35 = vld [vmem:[%s1473_s17 + $0x30] sm:$0xff]  ;;  %v235_v36 = vld [vmem:[%s1473_s17 + $0x38] sm:$0xff]  ;;  %v974_v37 = vpack.c.bf16 %v108_v33, %v107_v32  ;;  %v110_v39 = vld [vmem:[%s1471_s15 + $0x68] sm:$0xff]  ;;  %v1064_v63 = vmov 0.0   ;;  %s1500_s8 = sld [smem:[#allocation9_spill]]  ;;  %s1501_s17 = sld [smem:[#allocation10_spill]] }
  0x1a   :  { %877 = vmatprep.mubr.f32.mxu0 %v95_v28  ;;  %v996_v40 = vpack.c.bf16 %v235_v36, %v234_v35  ;;  %v78_v41 = vld [vmem:[%s1495_s6 + $0x8] sm:$0xff]  ;;  %v978_v43 = vpack.c.bf16 %v110_v39, %v109_v38  ;;  %v111_v44 = vld [vmem:[%s1471_s15 + $0x70] sm:$0xff]  ;;  %v112_v45 = vld [vmem:[%s1471_s15 + $0x78] sm:$0xff]  ;;  %896 = vmatprep.mubr.msk.f32.mxu1 %vm1063_vm1, %v1064_v63  ;;  %vm382_vm2 = vcmask 261120   ;;  %s1502_s9 = sld [smem:[#allocation11_spill]]  ;;  %s1503_s0 = sld [smem:[#allocation12_spill]] }
  0x1b   :  { %969 = vmatpush3.bf16.msra.mxu0 %v966_v23  ;;  %v90_v42 = vld [vmem:[%s1496_s27 + $0x8] sm:$0xff]  ;;  %v86_v46 = vadd.f32 %v777_v10, %v78_v41  ;;  %v982_v48 = vpack.c.bf16 %v112_v45, %v111_v44  ;;  %v780_v52 = vld [vmem:[%s1466_s10] ss:$0 sm:$0xff]  ;;  %v208_v0 = vld [vmem:[%s1472_s16 + $0x10] sm:$0xff]  ;;  %vm602_vm3 = vcmask 130048   ;;  %vm567_vm4 = vcmask 125952  }
  0x1c   :  { %971 = vmatprep.subr.bf16.mxu0 %v970_v31  ;;  %994 = vmatpush3.bf16.msra.mxu1 %v993_v34  ;;  %v92_v47 = vadd.f32 %v777_v10, %v90_v42  ;;  %v206_v59 = vld [vmem:[%s1472_s16] sm:$0xff]  ;;  %v207_v60 = vld [vmem:[%s1472_s16 + $0x8] sm:$0xff]  ;;  %v209_v1 = vld [vmem:[%s1472_s16 + $0x18] sm:$0xff]  ;;  %s1065_s3 = smov [#allocation2]   ;;  %vm749_vm5 = vcmask 58368  }
  0x1d   :  { %995 = vmatprep.subr.bf16.mxu1 %v1062_v5  ;;  %v88_v49 = vmax.f32 %v86_v46, 0.0  ;;  %v215_v53 = vld [vmem:[%s1497_s26] sm:$0xff]  ;;  %v999_v62 = vpack.c.bf16 %v207_v60, %v206_v59  ;;  %v1002_v2 = vpack.c.bf16 %v209_v1, %v208_v0  ;;  %v211_v4 = vld [vmem:[%s1472_s16 + $0x28] sm:$0xff]  ;;  %v212_v7 = vld [vmem:[%s1472_s16 + $0x30] sm:$0xff]  ;;  %s763_s26 = sshll.u32 %s1065_s3, 4  ;;  %s764_s26 = int_to_ptr.vmem [resolvable:$true] %s763_s26 }
  0x1e   :  { %v94_v50 = vmax.f32 %v92_v47, 0.0  ;;  %v224_v54 = vld [vmem:[%s1498_s4] sm:$0xff]  ;;  %v222_v55 = vadd.f32 %v780_v52, %v215_v53  ;;  %v213_v8 = vld [vmem:[%s1472_s16 + $0x38] sm:$0xff]  ;;  %v418_v11 = vld [vmem:[%s1475_s19 + $0x8] sm:$0xff]  ;;  %p1043_p1 = scmp.lt.s32.totalorder %s764_s26, %s764_s26 }
  0x1f   :  { %973 = vmatpush3.bf16.msra.mxu0 %v970_v31  ;;  %v225_v56 = vadd.f32 %v780_v52, %v224_v54  ;;  %v210_v3 = vld [vmem:[%s1472_s16 + $0x20] sm:$0xff]  ;;  %v1008_v9 = vpack.c.bf16 %v213_v8, %v212_v7  ;;  %v419_v25 = vld [vmem:[%s1475_s19 + $0x10] sm:$0xff]  ;;  %v420_v26 = vld [vmem:[%s1475_s19 + $0x18] sm:$0xff] }
  0x20   :  { %975 = vmatprep.subr.bf16.mxu0 %v974_v37  ;;  %997 = vmatpush3.bf16.msra.mxu1 %v996_v40  ;;  %v96_v51 = vadd.f32 %v94_v50, %v88_v49  ;;  %v223_v57 = vmax.f32 %v222_v55, 0.0  ;;  %v1005_v6 = vpack.c.bf16 %v211_v4, %v210_v3  ;;  %v417_v10 = vld [vmem:[%s1475_s19] sm:$0xff]  ;;  %v1014_v29 = vpack.c.bf16 %v420_v26, %v419_v25  ;;  %v400_v32 = vld [vmem:[%s1474_s18 + $0x8] sm:$0xff]  ;;  %v402_v38 = vld [vmem:[%s1474_s18 + $0x18] sm:$0xff] }
  0x21   :  { %998 = vmatprep.subr.bf16.mxu1 %v1062_v5  ;;  %v226_v58 = vmax.f32 %v225_v56, 0.0  ;;  %v1011_v12 = vpack.c.bf16 %v418_v11, %v417_v10  ;;  %v779_v15 = vld [vmem:[%s1499_s2] ss:$0 sm:$0xff]  ;;  %v601_v53 = vld [vmem:[%s1477_s21 + $0x8] sm:$0xff] }
  0x22   :  { %v785_v23 = vld [vmem:[%s1468_s12] ss:$0 sm:$0xff]  ;;  %v585_v59 = vld [vmem:[%s1476_s20 + $0x8] sm:$0xff] }
  0x23   :  { %977 = vmatpush3.bf16.msra.mxu0 %v974_v37  ;;  %v227_v61 = vadd.f32 %v226_v58, %v223_v57  ;;  %v404_v24 = vld [vmem:[%s1500_s8] sm:$0xf]  ;;  %v401_v37 = vld [vmem:[%s1474_s18 + $0x10] sm:$0xff] }
  0x24   :  { %979 = vmatprep.subr.bf16.mxu0 %v978_v43  ;;  %v411_v27 = vadd.f32 %v785_v23, %v404_v24  ;;  %v413_v28 = vld [vmem:[%s1501_s17] sm:$0xf]  ;;  %v1020_v39 = vpack.c.bf16 %v402_v38, %v401_v37 }
  0x25   :  { %897 = vmatmul.mubr.msk.f32.vlgmr.msra.gmra.mrb[0].mxu1 %vm188_vm0, %v227_v61  ;;  %v414_v30 = vadd.f32 %v785_v23, %v413_v28  ;;  %v399_v31 = vld [vmem:[%s1474_s18] sm:$0xff] }
  0x26   :  { %1000 = vmatpush3.bf16.msra.mxu1 %v999_v62  ;;  %915 = vmatprep.mubr.msk.f32.mxu1 %vm1063_vm1, %v1064_v63  ;;  %v412_v33 = vmax.f32 %v411_v27, 0.0  ;;  %v1017_v35 = vpack.c.bf16 %v400_v32, %v399_v31  ;;  %v784_v42 = vld [vmem:[%s1467_s11] ss:$0 sm:$0xff] }
  0x27   :  { %981 = vmatpush3.bf16.msra.mxu0 %v978_v43  ;;  %1001 = vmatprep.subr.bf16.mxu1 %v1062_v5  ;;  %v415_v34 = vmax.f32 %v414_v30, 0.0  ;;  %v790_v50 = vld [vmem:[%s1470_s14] ss:$0 sm:$0xff] }
  0x28   :  { %983 = vmatprep.subr.bf16.mxu0 %v982_v48  ;;  %v600_v52 = vld [vmem:[%s1477_s21] sm:$0xff] }
  0x29   :  { %v416_v36 = vadd.f32 %v415_v34, %v412_v33  ;;  %v596_v55 = vld [vmem:[%s1503_s0] sm:$0x3]  ;;  %v1023_v56 = vpack.c.bf16 %v601_v53, %v600_v52 }
  0x2a   :  { %1003 = vmatpush3.bf16.msra.mxu1 %v1002_v2  ;;  %v597_v57 = vadd.f32 %v790_v50, %v596_v55  ;;  %v584_v58 = vld [vmem:[%s1476_s20] sm:$0xff] }
  0x2b   :  { %985 = vmatpush3.bf16.msra.mxu0 %v982_v48  ;;  %1004 = vmatprep.subr.bf16.mxu1 %v1062_v5  ;;  %v1026_v62 = vpack.c.bf16 %v585_v59, %v584_v58 }
  0x2c   :  { %1010 = vmatprep.subr.bf16.mxu0 %v1062_v5  ;;  %v598_v61 = vmax.f32 %v597_v57, 0.0 }
  0x2e   :  { %878 = vmatmul.mubr.f32.vlgmr.msra.gmra.mrb[0].mxu0 %v96_v51  ;;  %1006 = vmatpush3.bf16.msra.mxu1 %v1005_v6  ;;  %v587_v51 = vld [vmem:[%s1502_s9] sm:$0x3] }
  0x2f   :  { %926 = vmatprep.mubr.msk.f32.mxu0 %vm1063_vm1, %v1064_v63  ;;  %1007 = vmatprep.subr.bf16.mxu1 %v1062_v5  ;;  %v594_v54 = vadd.f32 %v790_v50, %v587_v51 }
  0x30   :  { %1012 = vmatpush3.bf16.msra.mxu0 %v1011_v12 }
  0x31   :  { %1013 = vmatprep.subr.bf16.mxu0 %v1062_v5  ;;  %v595_v60 = vmax.f32 %v594_v54, 0.0 }
  0x32   :  { %1009 = vmatpush3.bf16.msra.mxu1 %v1008_v9 }
  0x33   :  { %1022 = vmatprep.subr.bf16.mxu1 %v1062_v5  ;;  %v599_v0 = vadd.f32 %v598_v61, %v595_v60 }
  0x34   :  { %1015 = vmatpush3.bf16.msra.mxu0 %v1014_v29 }
  0x35   :  { %1016 = vmatprep.subr.bf16.mxu0 %v1062_v5 }
  0x37   :  { %927 = vmatmul.mubr.msk.f32.vlgmr.msra.gmra.mrb[2].mxu0 %vm382_vm2, %v416_v36 }
  0x38   :  { %1018 = vmatpush3.bf16.msra.mxu0 %v1017_v35  ;;  %937 = vmatprep.mubr.msk.f32.mxu0 %vm1063_vm1, %v1064_v63 }
  0x39   :  { %1019 = vmatprep.subr.bf16.mxu0 %v1062_v5 }
  0x3c   :  { %1021 = vmatpush3.bf16.msra.mxu0 %v1020_v39 }
 0x101   :  { %v879_v13 = vpop.f32.mrb[0].mxu0 }
 0x102   :  { %190 = vst.msk [vmem:[%s1478_s22 + $0x8] sm:$0xff] %vm188_vm0, %v879_v13  ;;  %v179_v14 = vpop.f32.mrb[1].mxu0 }
 0x103   :  { %189 = vst.msk [vmem:[%s1478_s22] sm:$0xff] %vm188_vm0, %v179_v14 }
 0x10a   :  { %v192_v16 = vld [vmem:[%s1478_s22] ss:$2 sm:$0xff]  ;;  %v778_v17 = vld [vmem:[%s1478_s22 + $0x1] ss:$2 sm:$0xff] }
 0x10b   :  { %v201_v18 = vadd.f32 %v779_v15, %v192_v16  ;;  %v203_v19 = vadd.f32 %v779_v15, %v778_v17 }
 0x10d   :  { %v202_v20 = vmax.f32 %v201_v18, 0.0  ;;  %v204_v21 = vmax.f32 %v203_v19, 0.0 }
 0x10f   :  { %v205_v22 = vadd.f32 %v204_v21, %v202_v20 }
 0x111   :  { %916 = vmatmul.mubr.msk.f32.vlgmr.msra.gmra.mrb[0].mxu1 %vm188_vm0, %v205_v22 }
 0x112   :  { %944 = vmatprep.mubr.msk.f32.mxu1 %vm1063_vm1, %v1064_v63  ;;  %1024 = vmatpush3.bf16.msra.mxu1 %v1023_v56 }
 0x113   :  { %1025 = vmatprep.subr.bf16.mxu1 %v1062_v5  ;;  %v789_v5 = vld [vmem:[%s1469_s13] ss:$0 sm:$0xff]  ;;  %s1038_s13 = scalar_lea.vmem %s764_s26, 32 }
 0x114   :  { %p1039_p0 = scmp.ne.s32.totalorder %s764_s26, %s1038_s13  ;;  %p1044_p2 = scmp.lt.s32.totalorder %s1038_s13, %s1038_s13 }
 0x115   :  { %945 = vmatmul.mubr.msk.f32.vlgmr.msra.gmra.mrb[2].mxu1 %vm602_vm3, %v599_v0 }
 0x116   :  { %1027 = vmatpush3.bf16.msra.mxu1 %v1026_v62  ;;  %951 = vmatprep.mubr.msk.f32.mxu1 %vm1063_vm1, %v1064_v63  ;;  %p1045_p3 = por %p1044_p2, %p1043_p1 }
 0x118   :  { %p1046_p4 = pnand %p1045_p3, %p1039_p0 }
 0x1e4   :  { %v378_v40 = vpop.f32.mrb[0].mxu1 }
 0x1e5   :  { %383 = vst.msk [vmem:[%s1479_s23] sm:$0xff] %vm382_vm2, %v378_v40  ;;  %v917_v41 = vpop.f32.mrb[1].mxu1 }
 0x1ec   :  { %v385_v43 = vld [vmem:[%s1479_s23] ss:$2 sm:$0xf]  ;;  %v783_v44 = vld [vmem:[%s1479_s23 + $0x1] ss:$2 sm:$0xf] }
 0x1ed   :  { %v394_v45 = vadd.f32 %v784_v42, %v385_v43  ;;  %v396_v46 = vadd.f32 %v784_v42, %v783_v44 }
 0x1ef   :  { %v395_v47 = vmax.f32 %v394_v45, 0.0  ;;  %v397_v48 = vmax.f32 %v396_v46, 0.0 }
 0x1f1   :  { %v398_v49 = vadd.f32 %v397_v48, %v395_v47 }
 0x1f3   :  { %938 = vmatmul.mubr.msk.f32.vlgmr.msra.gmra.mrb[2].mxu0 %vm382_vm2, %v398_v49 }
 0x2c6   :  { %v563_v1 = vpop.f32.mrb[2].mxu0 }
 0x2c7   :  { %568 = vst.msk [vmem:[%s1480_s24] sm:$0xf] %vm567_vm4, %v563_v1  ;;  %v939_v2 = vpop.f32.mrb[3].mxu0 }
 0x2ce   :  { %v570_v3 = vld [vmem:[%s1480_s24] ss:$2 sm:$0x3]  ;;  %v788_v4 = vld [vmem:[%s1480_s24 + $0x1] ss:$2 sm:$0x3] }
 0x2cf   :  { %v579_v63 = vadd.f32 %v789_v5, %v570_v3  ;;  %v581_v6 = vadd.f32 %v789_v5, %v788_v4 }
 0x2d1   :  { %v580_v7 = vmax.f32 %v579_v63, 0.0  ;;  %v582_v8 = vmax.f32 %v581_v6, 0.0 }
 0x2d3   :  { %v583_v9 = vadd.f32 %v582_v8, %v580_v7 }
 0x2d5   :  { %952 = vmatmul.mubr.msk.f32.vlgmr.msra.gmra.mrb[2].mxu1 %vm602_vm3, %v583_v9 }
 0x3a8   :  { %v745_v10 = vpop.f32.mrb[2].mxu1 }
 0x3a9   :  { %750 = vst.msk [vmem:[#allocation2] sm:$0x3] %vm749_vm5, %v745_v10  ;;  %v953_v11 = vpop.f32.mrb[3].mxu1 }
 0x3aa   :  { %1049 = shalt.err (!%p1046_p4)
}
 0x3ab   :  { %s1050_s8 = scalar_lea.hbm %s1481_s25, 32 }
 0x3ac   :  { %p1051_p5 = scmp.ne.s32.totalorder %s1481_s25, %s1050_s8  ;;  %p1054_p6 = scmp.lt.u32.totalorder %s1050_s8, %s1481_s25 }
 0x3ae   :  { %p1056_p7 = pnand %p1054_p6, %p1051_p5 }
 0x3b0   :  { %1059 = shalt.err (!%p1056_p7)
}
 0x3b1   :  { %766 = dma.vmem_to_hbm [thread:$0]  %s764_s26, 32, %s1481_s25, [#allocation3]  }
 0x3b2   :  { %1060 = dma.done.wait [#allocation3], 32  }
 0x3b3   :  { %1061 = vsyncadd [#allocation3], 4294967264 }
 0x3b4   :  { %776 = vsyncpa [#allocation3], 1 }

</bundles_post_ra>
